<compile_context>
chip_gen: v7x
topology: tpu7x:2x2x1
jax: 0.10.0
libtpu: 0.0.40
codegen_flags: <defaults>
</compile_context>

<pallas_src>
import jax
import jax.numpy as jnp
from jax.experimental import pallas as pl
from jax.experimental.pallas import tpu as pltpu

D_IN, D_H, D_OUT = 30, 20, 10
H_PAD = 128           # hidden width padded to full lane width (MXU/VPU friendly)
OUT_PAD = 16          # stored output width (10 -> 16): narrow HBM writeback
DEFAULT_TILE_B = 4096


def _mlp_kernel(x_ref, w1_ref, b1_ref, w2_ref, b2_ref, o_ref):
    # x: (tile_b, 30) f32; w1: (30, 128); b1: (1, 128); w2: (128, 16); b2: (1, 16).
    x = x_ref[...]

    # Layer 1: Linear(30 -> 20, padded to 128 lanes) + ReLU
    h = jnp.dot(x, w1_ref[...], preferred_element_type=jnp.float32)
    h = jnp.maximum(h + b1_ref[...], 0.0)          # full-lane VPU add + max

    # Layer 2: Linear(20 -> 10, padded to 16 lanes) + Sigmoid (EUP)
    y = jnp.dot(h, w2_ref[...], preferred_element_type=jnp.float32)
    y = jax.nn.sigmoid(y + b2_ref[...])

    o_ref[...] = y.astype(o_ref.dtype)             # (tile_b, 16) store


def _round_up(n, m):
    return ((n + m - 1) // m) * m


def full_connect(x, w1, b1, w2, b2, *, tile_b=DEFAULT_TILE_B):
    """x: (B, 30) f32; w1: (30, 20); b1: (20,)|(1,20); w2: (20, 10); b2: (10,)|(1,10)."""
    B = x.shape[0]
    x = x.astype(jnp.float32)

    # --- Padded weight/bias preparation (layout plumbing, tiny arrays) ---
    w1p = jnp.zeros((D_IN, H_PAD), jnp.float32).at[:, :D_H].set(
        w1.astype(jnp.float32))
    b1p = jnp.zeros((1, H_PAD), jnp.float32).at[:, :D_H].set(
        b1.reshape(1, -1).astype(jnp.float32))
    w2p = jnp.zeros((H_PAD, OUT_PAD), jnp.float32).at[:D_H, :D_OUT].set(
        w2.astype(jnp.float32))
    b2p = jnp.zeros((1, OUT_PAD), jnp.float32).at[:, :D_OUT].set(
        b2.reshape(1, -1).astype(jnp.float32))

    # --- Batch tiling (no wrapper-side padding; ragged last block is masked) ---
    # Cap tile so large B still produces >= 4 grid steps (both v7x TCs get work).
    tile_b = min(tile_b, max(1024, _round_up(pl.cdiv(B, 4), 8)))
    # Never exceed the (sublane-rounded) batch; f32 sublane multiple of 8.
    tile_b = max(8, min(tile_b, _round_up(B, 8)))
    grid = (pl.cdiv(B, tile_b),)

    flops = 2 * B * (D_IN * H_PAD + H_PAD * OUT_PAD)
    bytes_accessed = (B * D_IN * 4 + B * OUT_PAD * 4
                      + (D_IN * H_PAD + H_PAD * OUT_PAD + H_PAD + OUT_PAD) * 4)

    out = pl.pallas_call(
        _mlp_kernel,
        out_shape=jax.ShapeDtypeStruct((B, OUT_PAD), jnp.float32),
        grid_spec=pltpu.PrefetchScalarGridSpec(
            num_scalar_prefetch=0,
            grid=grid,
            in_specs=[
                pl.BlockSpec((tile_b, D_IN), lambda i: (i, 0)),      # x tile
                pl.BlockSpec((D_IN, H_PAD), lambda i: (0, 0)),       # w1 (resident)
                pl.BlockSpec((1, H_PAD), lambda i: (0, 0)),          # b1 (resident)
                pl.BlockSpec((H_PAD, OUT_PAD), lambda i: (0, 0)),    # w2 (resident)
                pl.BlockSpec((1, OUT_PAD), lambda i: (0, 0)),        # b2 (resident)
            ],
            out_specs=pl.BlockSpec((tile_b, OUT_PAD), lambda i: (i, 0)),
        ),
        compiler_params=pltpu.CompilerParams(
            dimension_semantics=("parallel",),
            vmem_limit_bytes=32 * 1024 * 1024),
        cost_estimate=pl.CostEstimate(
            flops=flops,
            transcendentals=B * OUT_PAD,
            bytes_accessed=bytes_accessed),
    )(x, w1p, b1p, w2p, b2p)

    # Drop the padded output columns (they hold sigmoid(0)=0.5, not used).
    return out[:, :D_OUT]


def _reference(x, w1, b1, w2, b2):
    h = jnp.maximum(x @ w1 + b1.reshape(1, -1), 0.0)
    return jax.nn.sigmoid(h @ w2 + b2.reshape(1, -1))


if __name__ == "__main__":
    key = jax.random.PRNGKey(0)
    k_x, k_w1, k_b1, k_w2, k_b2 = jax.random.split(key, 5)

    B = 8

    x = jax.random.normal(k_x, (B, D_IN), dtype=jnp.float32)

    # Deterministic PyTorch-like init: U(-1/sqrt(fan_in), 1/sqrt(fan_in)).
    lim1 = 1.0 / jnp.sqrt(jnp.float32(D_IN))
    lim2 = 1.0 / jnp.sqrt(jnp.float32(D_H))
    w1 = jax.random.uniform(k_w1, (D_IN, D_H), jnp.float32, -lim1, lim1)
    b1 = jax.random.uniform(k_b1, (D_H,), jnp.float32, -lim1, lim1)
    w2 = jax.random.uniform(k_w2, (D_H, D_OUT), jnp.float32, -lim2, lim2)
    b2 = jax.random.uniform(k_b2, (D_OUT,), jnp.float32, -lim2, lim2)

    out = full_connect(x, w1, b1, w2, b2)
    out = jax.block_until_ready(out)

    ref = _reference(x, w1, b1, w2, b2)
    assert out.shape == (B, D_OUT), out.shape
    assert jnp.allclose(out, ref, atol=1e-5, rtol=1e-5)

    print("KERNEL_OK")
</pallas_src>

<mosaic_0001>
module attributes {stable_mosaic.version = 11 : i64} {
  func.func @_mlp_kernel(%arg0: i32, %arg1: memref<8x30xf32, #tpu.memory_space<vmem>>, %arg2: memref<30x128xf32, #tpu.memory_space<vmem>>, %arg3: memref<1x128xf32, #tpu.memory_space<vmem>>, %arg4: memref<128x16xf32, #tpu.memory_space<vmem>>, %arg5: memref<1x16xf32, #tpu.memory_space<vmem>>, %arg6: memref<8x16xf32, #tpu.memory_space<vmem>>) attributes {dimension_semantics = [#tpu.dimension_semantics<parallel>], iteration_bounds = array<i64: 1>, scalar_prefetch = 0 : i64, scratch_operands = 0 : i64, tpu.core_type = #tpu.core_type<tc>, window_params = [{transform_indices = @transform_0, window_bounds = array<i64: 8, 30>}, {pipeline_mode = #tpu.pipeline_mode<synchronous>, transform_indices = @transform_1, window_bounds = array<i64: 30, 128>}, {pipeline_mode = #tpu.pipeline_mode<synchronous>, transform_indices = @transform_2, window_bounds = array<i64: 1, 128>}, {pipeline_mode = #tpu.pipeline_mode<synchronous>, transform_indices = @transform_3, window_bounds = array<i64: 128, 16>}, {pipeline_mode = #tpu.pipeline_mode<synchronous>, transform_indices = @transform_4, window_bounds = array<i64: 1, 16>}, {transform_indices = @transform_5, window_bounds = array<i64: 8, 16>}]} {
    %c0 = arith.constant 0 : index
    %c0_0 = arith.constant 0 : index
    %0 = vector.load %arg1[%c0, %c0_0] : memref<8x30xf32, #tpu.memory_space<vmem>>, vector<8x30xf32>
    %c0_1 = arith.constant 0 : index
    %c0_2 = arith.constant 0 : index
    %1 = vector.load %arg2[%c0_1, %c0_2] : memref<30x128xf32, #tpu.memory_space<vmem>>, vector<30x128xf32>
    %cst = arith.constant dense<0.000000e+00> : vector<8x128xf32>
    %2 = tpu.matmul %0, %1, %cst {dimension_numbers = #tpu.dot_dimension_numbers<[1], [0], [0], [1], [0, 0, 1, 1], [], []>} : vector<8x30xf32>, vector<30x128xf32>, vector<8x128xf32> -> vector<8x128xf32>
    %c0_3 = arith.constant 0 : index
    %c0_4 = arith.constant 0 : index
    %3 = vector.load %arg3[%c0_3, %c0_4] : memref<1x128xf32, #tpu.memory_space<vmem>>, vector<1x128xf32>
    %4 = vector.broadcast %3 : vector<1x128xf32> to vector<8x128xf32>
    %5 = arith.addf %2, %4 : vector<8x128xf32>
    %cst_5 = arith.constant 0.000000e+00 : f32
    %6 = vector.broadcast %cst_5 : f32 to vector<8x128xf32>
    %7 = arith.maximumf %5, %6 : vector<8x128xf32>
    %c0_6 = arith.constant 0 : index
    %c0_7 = arith.constant 0 : index
    %8 = vector.load %arg4[%c0_6, %c0_7] : memref<128x16xf32, #tpu.memory_space<vmem>>, vector<128x16xf32>
    %cst_8 = arith.constant dense<0.000000e+00> : vector<8x16xf32>
    %9 = tpu.matmul %7, %8, %cst_8 {dimension_numbers = #tpu.dot_dimension_numbers<[1], [0], [0], [1], [0, 0, 1, 1], [], []>} : vector<8x128xf32>, vector<128x16xf32>, vector<8x16xf32> -> vector<8x16xf32>
    %c0_9 = arith.constant 0 : index
    %c0_10 = arith.constant 0 : index
    %10 = vector.load %arg5[%c0_9, %c0_10] : memref<1x16xf32, #tpu.memory_space<vmem>>, vector<1x16xf32>
    %11 = vector.broadcast %10 : vector<1x16xf32> to vector<8x16xf32>
    %12 = arith.addf %9, %11 : vector<8x16xf32>
    %13 = arith.negf %12 : vector<8x16xf32>
    %14 = math.exp %13 : vector<8x16xf32>
    %cst_11 = arith.constant 1.000000e+00 : f32
    %15 = vector.broadcast %cst_11 : f32 to vector<8x16xf32>
    %16 = arith.addf %15, %14 : vector<8x16xf32>
    %17 = arith.divf %15, %16 : vector<8x16xf32>
    %c0_12 = arith.constant 0 : index
    %c0_13 = arith.constant 0 : index
    %18 = vector.load %arg6[%c0_12, %c0_13] : memref<8x16xf32, #tpu.memory_space<vmem>>, vector<8x16xf32>
    tpu.vector_store %arg6[%c0_12, %c0_13], %17 {strides = array<i32>} : memref<8x16xf32, #tpu.memory_space<vmem>>, vector<8x16xf32>,
    return
  }
  func.func @transform_0(%arg0: i32) -> (i32, i32) {
    %c0_i32 = arith.constant 0 : i32
    %c0_i32_0 = arith.constant 0 : i32
    return %arg0, %c0_i32 : i32, i32
  }
  func.func @transform_1(%arg0: i32) -> (i32, i32) {
    %c0_i32 = arith.constant 0 : i32
    %c0_i32_0 = arith.constant 0 : i32
    %c0_i32_1 = arith.constant 0 : i32
    return %c0_i32, %c0_i32_0 : i32, i32
  }
  func.func @transform_2(%arg0: i32) -> (i32, i32) {
    %c0_i32 = arith.constant 0 : i32
    %c0_i32_0 = arith.constant 0 : i32
    %c0_i32_1 = arith.constant 0 : i32
    return %c0_i32, %c0_i32_0 : i32, i32
  }
  func.func @transform_3(%arg0: i32) -> (i32, i32) {
    %c0_i32 = arith.constant 0 : i32
    %c0_i32_0 = arith.constant 0 : i32
    %c0_i32_1 = arith.constant 0 : i32
    return %c0_i32, %c0_i32_0 : i32, i32
  }
  func.func @transform_4(%arg0: i32) -> (i32, i32) {
    %c0_i32 = arith.constant 0 : i32
    %c0_i32_0 = arith.constant 0 : i32
    %c0_i32_1 = arith.constant 0 : i32
    return %c0_i32, %c0_i32_0 : i32, i32
  }
  func.func @transform_5(%arg0: i32) -> (i32, i32) {
    %c0_i32 = arith.constant 0 : i32
    %c0_i32_0 = arith.constant 0 : i32
    return %arg0, %c0_i32 : i32, i32
  }
}

</mosaic_0001>

<bundles_post_ra>
// kernel: tpu_custom_call.1
= control target key start
LH: loop header
LB: loop body
LE: loop exit
PB: predicated region body
PF: predicated region fallthrough
CT: control target
= control target key end

     0   :  { %vm37_vm0 = vcmask 1045504   ;;  %v364_v3 = vmov 0.0|0.0   ;;  %vm365_vm1 = vmmov 0   ;;  %v366_v6 = vmov 0.0   ;;  %s481_s0 = inlined_call_operand.vmem [shape: f32[8,30], index: 0, kind: input, shape index: {}]   ;;  %s482_s1 = inlined_call_operand.vmem [shape: f32[30,128], index: 1, kind: input, shape index: {}]   ;;  %s483_s2 = inlined_call_operand.vmem [shape: f32[1,128], index: 2, kind: input, shape index: {}]   ;;  %s484_s3 = inlined_call_operand.vmem [shape: f32[128,16], index: 3, kind: input, shape index: {}]   ;;  %s485_s4 = inlined_call_operand.vmem [shape: f32[1,16], index: 4, kind: input, shape index: {}]   ;;  %s486_s5 = inlined_call_operand.hbm [shape: f32[8,16], index: 5, kind: output, shape index: {}]  }
   0x1   :  { %v22_v0 = vld [vmem:[%s482_s1] sm:$0xff]  ;;  %v23_v1 = vld [vmem:[%s482_s1 + $0x8] sm:$0xff]  ;;  %v24_v2 = vld [vmem:[%s482_s1 + $0x10] sm:$0xff]  ;;  %300 = vmatprep.subr.bf16.mxu0 %v364_v3  ;;  %307 = vmatprep.subr.bf16.mxu1 %v364_v3  ;;  %vm367_vm2 = vmmov 1   ;;  %vm33_vm4 = vcmask 244736  }
   0x2   :  { %v301_v4 = vpack.c.bf16 %v23_v1, %v22_v0  ;;  %v25_v5 = vld [vmem:[%s482_s1 + $0x18] sm:$0x3f]  ;;  %262 = vmatprep.mubr.msk.f32.mxu0 %vm365_vm1, %v366_v6  ;;  %v112_v7 = vld [vmem:[%s484_s3] sm:$0xff]  ;;  %v113_v8 = vld [vmem:[%s484_s3 + $0x8] sm:$0xff]  ;;  %297 = vmatprep.mubr.msk.f32.mxu1 %vm365_vm1, %v366_v6 }
   0x3   :  { %v114_v9 = vld [vmem:[%s484_s3 + $0x10] sm:$0xff]  ;;  %v304_v10 = vpack.c.bf16 %v25_v5, %v24_v2  ;;  %v308_v11 = vpack.c.bf16 %v113_v8, %v112_v7  ;;  %v115_v12 = vld [vmem:[%s484_s3 + $0x18] sm:$0xff]  ;;  %vm305_vm3 = vmpackc.low %vm37_vm0, %vm367_vm2 }
   0x4   :  { %302 = vmatpush3.bf16.msra.mxu0 %v301_v4  ;;  %v311_v13 = vpack.c.bf16 %v115_v12, %v114_v9  ;;  %v116_v14 = vld [vmem:[%s484_s3 + $0x20] sm:$0xff]  ;;  %v117_v15 = vld [vmem:[%s484_s3 + $0x28] sm:$0xff] }
   0x5   :  { %303 = vmatprep.subr.bf16.mxu0 %v364_v3  ;;  %309 = vmatpush3.bf16.msra.mxu1 %v308_v11  ;;  %v21_v16 = vld [vmem:[%s481_s0] sm:$0xff] }
   0x6   :  { %310 = vmatprep.subr.bf16.mxu1 %v364_v3 }
   0x8   :  { %306 = vmatpush3.bf16.msk.msra.mxu0 %vm305_vm3, %v304_v10 }
   0x9   :  { %10 = vsyncpa [#allocation3], 0  ;;  %312 = vmatpush3.bf16.msra.mxu1 %v311_v13  ;;  %v314_v17 = vpack.c.bf16 %v117_v15, %v116_v14  ;;  %v118_v18 = vld [vmem:[%s484_s3 + $0x30] sm:$0xff]  ;;  %v119_v19 = vld [vmem:[%s484_s3 + $0x38] sm:$0xff]  ;;  %vm211_vm5 = vcmask 130048  }
   0xa   :  { %313 = vmatprep.subr.bf16.mxu1 %v364_v3  ;;  %v317_v20 = vpack.c.bf16 %v119_v19, %v118_v18  ;;  %v120_v21 = vld [vmem:[%s484_s3 + $0x40] sm:$0xff]  ;;  %v121_v22 = vld [vmem:[%s484_s3 + $0x48] sm:$0xff]  ;;  %v122_v24 = vld [vmem:[%s484_s3 + $0x50] sm:$0xff] }
   0xb   :  { %263 = vmatmul.mubr.msk.f32.vlgmr.msra.gmra.mrb[0].mxu0 %vm33_vm4, %v21_v16  ;;  %v320_v23 = vpack.c.bf16 %v121_v22, %v120_v21  ;;  %v123_v25 = vld [vmem:[%s484_s3 + $0x58] sm:$0xff]  ;;  %v124_v27 = vld [vmem:[%s484_s3 + $0x60] sm:$0xff]  ;;  %v125_v28 = vld [vmem:[%s484_s3 + $0x68] sm:$0xff] }
   0xc   :  { %v323_v26 = vpack.c.bf16 %v123_v25, %v122_v24  ;;  %v326_v29 = vpack.c.bf16 %v125_v28, %v124_v27  ;;  %v126_v30 = vld [vmem:[%s484_s3 + $0x70] sm:$0xff]  ;;  %v127_v31 = vld [vmem:[%s484_s3 + $0x78] sm:$0xff]  ;;  %v227_v33 = vld [vmem:[%s483_s2] ss:$0 sm:$0xff]  ;;  %s368_s3 = smov [#allocation2]  }
   0xd   :  { %315 = vmatpush3.bf16.msra.mxu1 %v314_v17  ;;  %v329_v32 = vpack.c.bf16 %v127_v31, %v126_v30  ;;  %v230_v38 = vld [vmem:[%s485_s4] ss:$0 sm:$0xff]  ;;  %s219_s11 = sshll.u32 %s368_s3, 4  ;;  %s220_s11 = int_to_ptr.vmem [resolvable:$true] %s219_s11 }
   0xe   :  { %316 = vmatprep.subr.bf16.mxu1 %v364_v3  ;;  %s340_s2 = scalar_lea.vmem %s220_s11, 128  ;;  %p345_p1 = scmp.lt.s32.totalorder %s220_s11, %s220_s11 }
   0xf   :  { %p341_p0 = scmp.ne.s32.totalorder %s220_s11, %s340_s2  ;;  %p346_p2 = scmp.lt.s32.totalorder %s340_s2, %s340_s2 }
  0x11   :  { %318 = vmatpush3.bf16.msra.mxu1 %v317_v20  ;;  %p347_p3 = por %p346_p2, %p345_p1 }
  0x12   :  { %319 = vmatprep.subr.bf16.mxu1 %v364_v3 }
  0x13   :  { %p348_p4 = pnand %p347_p3, %p341_p0 }
  0x15   :  { %321 = vmatpush3.bf16.msra.mxu1 %v320_v23 }
  0x16   :  { %322 = vmatprep.subr.bf16.mxu1 %v364_v3 }
  0x19   :  { %324 = vmatpush3.bf16.msra.mxu1 %v323_v26 }
  0x1a   :  { %325 = vmatprep.subr.bf16.mxu1 %v364_v3 }
  0x1d   :  { %327 = vmatpush3.bf16.msra.mxu1 %v326_v29 }
  0x1e   :  { %328 = vmatprep.subr.bf16.mxu1 %v364_v3 }
  0x21   :  { %330 = vmatpush3.bf16.msra.mxu1 %v329_v32 }
  0xde   :  { %v107_v34 = vpop.f32.mrb[0].mxu0 }
  0xdf   :  { %v108_v35 = vadd.f32 %v227_v33, %v107_v34  ;;  %v264_v36 = vpop.f32.mrb[1].mxu0 }
  0xe1   :  { %v111_v37 = vmax.f32 %v108_v35, 0.0 }
  0xe3   :  { %298 = vmatmul.mubr.f32.vlgmr.msra.gmra.mrb[0].mxu1 %v111_v37 }
 0x1b6   :  { %v201_v39 = vpop.f32.mrb[0].mxu1 }
 0x1b7   :  { %v202_v40 = vadd.f32 %v230_v38, %v201_v39  ;;  %v299_v41 = vpop.f32.mrb[1].mxu1 }
 0x1b9   :  { %v231_v42 = vmul.f32 -1.442695, %v202_v40 }
 0x1bb   :  { %336 = vpow2.f32 %v231_v42 }
 0x1c5   :  { %v337_v43 = vpop.eup %336 }
 0x1c6   :  { %v208_v44 = vadd.f32 1.0, %v337_v43 }
 0x1c8   :  { %338 = vrcp.f32 %v208_v44 }
 0x1d2   :  { %v339_v45 = vpop.eup %338 }
 0x1d3   :  { %212 = vst.msk [vmem:[#allocation2] sm:$0xff] %vm211_vm5, %v339_v45 }
 0x1d4   :  { %351 = shalt.err (!%p348_p4)
}
 0x1d5   :  { %s352_s13 = scalar_lea.hbm %s486_s5, 128 }
 0x1d6   :  { %p353_p5 = scmp.ne.s32.totalorder %s486_s5, %s352_s13  ;;  %p356_p6 = scmp.lt.u32.totalorder %s352_s13, %s486_s5 }
 0x1d8   :  { %p358_p7 = pnand %p356_p6, %p353_p5 }
 0x1da   :  { %361 = shalt.err (!%p358_p7)
}
 0x1db   :  { %222 = dma.vmem_to_hbm [thread:$0]  %s220_s11, 128, %s486_s5, [#allocation3]  }
 0x1dc   :  { %362 = dma.done.wait [#allocation3], 128  }
 0x1dd   :  { %363 = vsyncadd [#allocation3], 4294967168 }
 0x1de   :  { %226 = vsyncpa [#allocation3], 1 }

</bundles_post_ra>
